<compile_context>
chip_gen: v7x
topology: tpu7x:2x2x1
jax: 0.10.0
libtpu: 0.0.40
codegen_flags: <defaults>
</compile_context>

<pallas_src>
import functools

import jax
import jax.numpy as jnp
from jax.experimental import pallas as pl
from jax.experimental.pallas import tpu as pltpu

# Layer widths exactly as the PyTorch module.
ENC_DIMS = [28 * 28, 128, 64, 12, 3]
DEC_DIMS = [3, 12, 64, 128, 28 * 28]

D_IN = 28 * 28        # 784
D_PAD = 7 * 128       # 896: lane-dense padding of the 784-wide feature dim


def _round_up(n, m):
    return ((n + m - 1) // m) * m


def _autoencoder_kernel(x_ref,
                        w1, b1, w2, b2, w3, b3, w4, b4,      # encoder params
                        w5, b5, w6, b6, w7, b7, w8, b8,      # decoder params
                        enc_ref, dec_ref):
    x = x_ref[...]                                           # (TB, 896) f32

    def linear(h, w_ref, b_ref):
        return jnp.dot(h, w_ref[...], preferred_element_type=jnp.float32) + b_ref[...]

    # ----- encoder -----
    # Big layer (896->128): bf16 MXU inputs, f32 accumulate.  Padded x lanes
    # are zero so the extra w1 rows contribute nothing.
    h = jnp.maximum(linear(x.astype(jnp.bfloat16), w1, b1), 0.0)
    h = jnp.maximum(linear(h, w2, b2), 0.0)
    h = jnp.maximum(linear(h, w3, b3), 0.0)
    enc = linear(h, w4, b4)                       # no activation on last enc layer
    enc_ref[...] = enc.astype(enc_ref.dtype)

    # ----- decoder -----
    h = jnp.maximum(linear(enc, w5, b5), 0.0)
    h = jnp.maximum(linear(h, w6, b6), 0.0)
    h = jnp.maximum(linear(h, w7, b7), 0.0)
    # Big layer (128->896): bf16 MXU inputs, f32 accumulate; padded output
    # lanes are tanh(0) = 0 and get sliced off in the wrapper.
    dec = jnp.tanh(linear(h.astype(jnp.bfloat16), w8, b8))
    dec_ref[...] = dec.astype(dec_ref.dtype)


def prepare_params(params):
    """Pad/cast the plain-f32 params for the kernel (lane-dense + bf16 big layers)."""
    (w1, b1, w2, b2, w3, b3, w4, b4,
     w5, b5, w6, b6, w7, b7, w8, b8) = params
    w1p = jnp.pad(w1, ((0, D_PAD - D_IN), (0, 0))).astype(jnp.bfloat16)   # (896, 128) bf16
    w8p = jnp.pad(w8, ((0, 0), (0, D_PAD - D_IN))).astype(jnp.bfloat16)   # (128, 896) bf16
    b8p = jnp.pad(b8, ((0, 0), (0, D_PAD - D_IN)))                        # (1, 896) f32
    return [w1p, b1, w2, b2, w3, b3, w4, b4,
            w5, b5, w6, b6, w7, b7, w8p, b8p]


def autoencoder_forward(x, params, *, tb=512):
    """x: (B, 784) float32. params: flat list [w1,b1,...,w8,b8] (plain f32).

    tb is the batch tile (multiple of 8).  Default 512 keeps the
    double-buffered x/dec tiles (~10 MiB) inside the 32 MiB scoped-VMEM limit
    on all of v5e / v6e / v7x.
    """
    assert tb % 8 == 0
    B = x.shape[0]
    assert x.shape[1] == D_IN

    kparams = prepare_params(params)

    # Batch tiling: pad B up to a multiple of the tile, slice back at the end.
    tile_b = min(tb, _round_up(B, 8))
    b_pad = _round_up(B, tile_b)
    x_p = jnp.pad(x, ((0, b_pad - B), (0, D_PAD - D_IN)))

    grid = (pl.cdiv(b_pad, tile_b),)

    tile_map = lambda i: (i, 0)     # batch-tiled arrays
    const_map = lambda i: (0, 0)    # weights/biases: resident across grid steps

    in_specs = [pl.BlockSpec((tile_b, D_PAD), tile_map)]
    in_specs += [pl.BlockSpec(p.shape, const_map) for p in kparams]

    out_specs = (
        pl.BlockSpec((tile_b, ENC_DIMS[-1]), tile_map),
        pl.BlockSpec((tile_b, D_PAD), tile_map),
    )

    enc, dec = pl.pallas_call(
        _autoencoder_kernel,
        grid=grid,
        out_shape=(
            jax.ShapeDtypeStruct((b_pad, ENC_DIMS[-1]), jnp.float32),   # encode
            jax.ShapeDtypeStruct((b_pad, D_PAD), jnp.float32),          # decode (padded)
        ),
        in_specs=in_specs,
        out_specs=out_specs,
        compiler_params=pltpu.CompilerParams(
            # Batch axis is independent -> megacore/2-TC sharding on v7x.
            dimension_semantics=("parallel",),
            vmem_limit_bytes=32 * 1024 * 1024,
        ),
    )(x_p, *kparams)

    return enc[:B], dec[:B, :D_IN]


def init_params(key):
    """Deterministic synthetic params. Weights stored (in, out); biases (1, out)."""
    params = []
    for dims in (ENC_DIMS, DEC_DIMS):
        for din, dout in zip(dims[:-1], dims[1:]):
            key, kw, kb = jax.random.split(key, 3)
            bound = 1.0 / jnp.sqrt(din)
            w = jax.random.uniform(kw, (din, dout), jnp.float32, -bound, bound)
            b = jax.random.uniform(kb, (1, dout), jnp.float32, -bound, bound)
            params += [w, b]
    return params


def reference_forward(x, params):
    """Plain-JAX f32 reference with identical semantics (for a sanity check)."""
    h = x
    for i in range(4):
        w, b = params[2 * i], params[2 * i + 1]
        h = h @ w + b
        if i < 3:
            h = jnp.maximum(h, 0.0)
    enc = h
    h = enc
    for i in range(4, 8):
        w, b = params[2 * i], params[2 * i + 1]
        h = h @ w + b
        h = jnp.maximum(h, 0.0) if i < 7 else jnp.tanh(h)
    return enc, h


if __name__ == "__main__":
    key = jax.random.PRNGKey(0)
    kx, kp = jax.random.split(key)

    # Small test: B deliberately not a multiple of the tile to exercise the
    # batch padding path, and tb=16 so the grid has several steps (pipelining).
    B = 50
    x = jax.random.normal(kx, (B, D_IN), jnp.float32)
    params = init_params(kp)

    fwd = jax.jit(functools.partial(autoencoder_forward, tb=16))
    enc, dec = fwd(x, params)
    enc = jax.block_until_ready(enc)
    dec = jax.block_until_ready(dec)

    enc_ref, dec_ref = reference_forward(x, params)
    assert enc.shape == (B, 3) and dec.shape == (B, D_IN)
    # Slightly looser tolerance: the two big layers use bf16 MXU inputs.
    assert jnp.allclose(enc, enc_ref, atol=3e-2, rtol=3e-2)
    assert jnp.allclose(dec, dec_ref, atol=3e-2, rtol=3e-2)

    print("KERNEL_OK")
</pallas_src>

<mosaic_0001>
module attributes {stable_mosaic.version = 11 : i64} {
  func.func @_autoencoder_kernel(%arg0: i32, %arg1: memref<16x896xf32, #tpu.memory_space<vmem>>, %arg2: memref<896x128xbf16, #tpu.memory_space<vmem>>, %arg3: memref<1x128xf32, #tpu.memory_space<vmem>>, %arg4: memref<128x64xf32, #tpu.memory_space<vmem>>, %arg5: memref<1x64xf32, #tpu.memory_space<vmem>>, %arg6: memref<64x12xf32, #tpu.memory_space<vmem>>, %arg7: memref<1x12xf32, #tpu.memory_space<vmem>>, %arg8: memref<12x3xf32, #tpu.memory_space<vmem>>, %arg9: memref<1x3xf32, #tpu.memory_space<vmem>>, %arg10: memref<3x12xf32, #tpu.memory_space<vmem>>, %arg11: memref<1x12xf32, #tpu.memory_space<vmem>>, %arg12: memref<12x64xf32, #tpu.memory_space<vmem>>, %arg13: memref<1x64xf32, #tpu.memory_space<vmem>>, %arg14: memref<64x128xf32, #tpu.memory_space<vmem>>, %arg15: memref<1x128xf32, #tpu.memory_space<vmem>>, %arg16: memref<128x896xbf16, #tpu.memory_space<vmem>>, %arg17: memref<1x896xf32, #tpu.memory_space<vmem>>, %arg18: memref<16x3xf32, #tpu.memory_space<vmem>>, %arg19: memref<16x896xf32, #tpu.memory_space<vmem>>) attributes {dimension_semantics = [#tpu.dimension_semantics<parallel>], iteration_bounds = array<i64: 4>, scalar_prefetch = 0 : i64, scratch_operands = 0 : i64, tpu.core_type = #tpu.core_type<tc>, window_params = [{transform_indices = @transform_0, window_bounds = array<i64: 16, 896>}, {pipeline_mode = #tpu.pipeline_mode<synchronous>, transform_indices = @transform_1, window_bounds = array<i64: 896, 128>}, {pipeline_mode = #tpu.pipeline_mode<synchronous>, transform_indices = @transform_2, window_bounds = array<i64: 1, 128>}, {pipeline_mode = #tpu.pipeline_mode<synchronous>, transform_indices = @transform_3, window_bounds = array<i64: 128, 64>}, {pipeline_mode = #tpu.pipeline_mode<synchronous>, transform_indices = @transform_4, window_bounds = array<i64: 1, 64>}, {pipeline_mode = #tpu.pipeline_mode<synchronous>, transform_indices = @transform_5, window_bounds = array<i64: 64, 12>}, {pipeline_mode = #tpu.pipeline_mode<synchronous>, transform_indices = @transform_6, window_bounds = array<i64: 1, 12>}, {pipeline_mode = #tpu.pipeline_mode<synchronous>, transform_indices = @transform_7, window_bounds = array<i64: 12, 3>}, {pipeline_mode = #tpu.pipeline_mode<synchronous>, transform_indices = @transform_8, window_bounds = array<i64: 1, 3>}, {pipeline_mode = #tpu.pipeline_mode<synchronous>, transform_indices = @transform_9, window_bounds = array<i64: 3, 12>}, {pipeline_mode = #tpu.pipeline_mode<synchronous>, transform_indices = @transform_10, window_bounds = array<i64: 1, 12>}, {pipeline_mode = #tpu.pipeline_mode<synchronous>, transform_indices = @transform_11, window_bounds = array<i64: 12, 64>}, {pipeline_mode = #tpu.pipeline_mode<synchronous>, transform_indices = @transform_12, window_bounds = array<i64: 1, 64>}, {pipeline_mode = #tpu.pipeline_mode<synchronous>, transform_indices = @transform_13, window_bounds = array<i64: 64, 128>}, {pipeline_mode = #tpu.pipeline_mode<synchronous>, transform_indices = @transform_14, window_bounds = array<i64: 1, 128>}, {pipeline_mode = #tpu.pipeline_mode<synchronous>, transform_indices = @transform_15, window_bounds = array<i64: 128, 896>}, {pipeline_mode = #tpu.pipeline_mode<synchronous>, transform_indices = @transform_16, window_bounds = array<i64: 1, 896>}, {transform_indices = @transform_17, window_bounds = array<i64: 16, 3>}, {transform_indices = @transform_18, window_bounds = array<i64: 16, 896>}]} {
    %c0 = arith.constant 0 : index
    %c0_0 = arith.constant 0 : index
    %0 = vector.load %arg1[%c0, %c0_0] : memref<16x896xf32, #tpu.memory_space<vmem>>, vector<16x896xf32>
    %1 = arith.truncf %0 : vector<16x896xf32> to vector<16x896xbf16>
    %c0_1 = arith.constant 0 : index
    %c0_2 = arith.constant 0 : index
    %2 = vector.load %arg2[%c0_1, %c0_2] : memref<896x128xbf16, #tpu.memory_space<vmem>>, vector<896x128xbf16>
    %cst = arith.constant dense<0.000000e+00> : vector<16x128xf32>
    %3 = tpu.matmul %1, %2, %cst {dimension_numbers = #tpu.dot_dimension_numbers<[1], [0], [0], [1], [0, 0, 1, 1], [], []>} : vector<16x896xbf16>, vector<896x128xbf16>, vector<16x128xf32> -> vector<16x128xf32>
    %c0_3 = arith.constant 0 : index
    %c0_4 = arith.constant 0 : index
    %4 = vector.load %arg3[%c0_3, %c0_4] : memref<1x128xf32, #tpu.memory_space<vmem>>, vector<1x128xf32>
    %5 = vector.broadcast %4 : vector<1x128xf32> to vector<16x128xf32>
    %6 = arith.addf %3, %5 : vector<16x128xf32>
    %cst_5 = arith.constant 0.000000e+00 : f32
    %7 = vector.broadcast %cst_5 : f32 to vector<16x128xf32>
    %8 = arith.maximumf %6, %7 : vector<16x128xf32>
    %c0_6 = arith.constant 0 : index
    %c0_7 = arith.constant 0 : index
    %9 = vector.load %arg4[%c0_6, %c0_7] : memref<128x64xf32, #tpu.memory_space<vmem>>, vector<128x64xf32>
    %cst_8 = arith.constant dense<0.000000e+00> : vector<16x64xf32>
    %10 = tpu.matmul %8, %9, %cst_8 {dimension_numbers = #tpu.dot_dimension_numbers<[1], [0], [0], [1], [0, 0, 1, 1], [], []>} : vector<16x128xf32>, vector<128x64xf32>, vector<16x64xf32> -> vector<16x64xf32>
    %c0_9 = arith.constant 0 : index
    %c0_10 = arith.constant 0 : index
    %11 = vector.load %arg5[%c0_9, %c0_10] : memref<1x64xf32, #tpu.memory_space<vmem>>, vector<1x64xf32>
    %12 = vector.broadcast %11 : vector<1x64xf32> to vector<16x64xf32>
    %13 = arith.addf %10, %12 : vector<16x64xf32>
    %cst_11 = arith.constant 0.000000e+00 : f32
    %14 = vector.broadcast %cst_11 : f32 to vector<16x64xf32>
    %15 = arith.maximumf %13, %14 : vector<16x64xf32>
    %c0_12 = arith.constant 0 : index
    %c0_13 = arith.constant 0 : index
    %16 = vector.load %arg6[%c0_12, %c0_13] : memref<64x12xf32, #tpu.memory_space<vmem>>, vector<64x12xf32>
    %cst_14 = arith.constant dense<0.000000e+00> : vector<16x12xf32>
    %17 = tpu.matmul %15, %16, %cst_14 {dimension_numbers = #tpu.dot_dimension_numbers<[1], [0], [0], [1], [0, 0, 1, 1], [], []>} : vector<16x64xf32>, vector<64x12xf32>, vector<16x12xf32> -> vector<16x12xf32>
    %c0_15 = arith.constant 0 : index
    %c0_16 = arith.constant 0 : index
    %18 = vector.load %arg7[%c0_15, %c0_16] : memref<1x12xf32, #tpu.memory_space<vmem>>, vector<1x12xf32>
    %19 = vector.broadcast %18 : vector<1x12xf32> to vector<16x12xf32>
    %20 = arith.addf %17, %19 : vector<16x12xf32>
    %cst_17 = arith.constant 0.000000e+00 : f32
    %21 = vector.broadcast %cst_17 : f32 to vector<16x12xf32>
    %22 = arith.maximumf %20, %21 : vector<16x12xf32>
    %c0_18 = arith.constant 0 : index
    %c0_19 = arith.constant 0 : index
    %23 = vector.load %arg8[%c0_18, %c0_19] : memref<12x3xf32, #tpu.memory_space<vmem>>, vector<12x3xf32>
    %cst_20 = arith.constant dense<0.000000e+00> : vector<16x3xf32>
    %24 = tpu.matmul %22, %23, %cst_20 {dimension_numbers = #tpu.dot_dimension_numbers<[1], [0], [0], [1], [0, 0, 1, 1], [], []>} : vector<16x12xf32>, vector<12x3xf32>, vector<16x3xf32> -> vector<16x3xf32>
    %c0_21 = arith.constant 0 : index
    %c0_22 = arith.constant 0 : index
    %25 = vector.load %arg9[%c0_21, %c0_22] : memref<1x3xf32, #tpu.memory_space<vmem>>, vector<1x3xf32>
    %26 = vector.broadcast %25 : vector<1x3xf32> to vector<16x3xf32>
    %27 = arith.addf %24, %26 : vector<16x3xf32>
    %c0_23 = arith.constant 0 : index
    %c0_24 = arith.constant 0 : index
    %28 = vector.load %arg18[%c0_23, %c0_24] : memref<16x3xf32, #tpu.memory_space<vmem>>, vector<16x3xf32>
    tpu.vector_store %arg18[%c0_23, %c0_24], %27 {strides = array<i32>} : memref<16x3xf32, #tpu.memory_space<vmem>>, vector<16x3xf32>,
    %c0_25 = arith.constant 0 : index
    %c0_26 = arith.constant 0 : index
    %29 = vector.load %arg10[%c0_25, %c0_26] : memref<3x12xf32, #tpu.memory_space<vmem>>, vector<3x12xf32>
    %cst_27 = arith.constant dense<0.000000e+00> : vector<16x12xf32>
    %30 = tpu.matmul %27, %29, %cst_27 {dimension_numbers = #tpu.dot_dimension_numbers<[1], [0], [0], [1], [0, 0, 1, 1], [], []>} : vector<16x3xf32>, vector<3x12xf32>, vector<16x12xf32> -> vector<16x12xf32>
    %c0_28 = arith.constant 0 : index
    %c0_29 = arith.constant 0 : index
    %31 = vector.load %arg11[%c0_28, %c0_29] : memref<1x12xf32, #tpu.memory_space<vmem>>, vector<1x12xf32>
    %32 = vector.broadcast %31 : vector<1x12xf32> to vector<16x12xf32>
    %33 = arith.addf %30, %32 : vector<16x12xf32>
    %cst_30 = arith.constant 0.000000e+00 : f32
    %34 = vector.broadcast %cst_30 : f32 to vector<16x12xf32>
    %35 = arith.maximumf %33, %34 : vector<16x12xf32>
    %c0_31 = arith.constant 0 : index
    %c0_32 = arith.constant 0 : index
    %36 = vector.load %arg12[%c0_31, %c0_32] : memref<12x64xf32, #tpu.memory_space<vmem>>, vector<12x64xf32>
    %cst_33 = arith.constant dense<0.000000e+00> : vector<16x64xf32>
    %37 = tpu.matmul %35, %36, %cst_33 {dimension_numbers = #tpu.dot_dimension_numbers<[1], [0], [0], [1], [0, 0, 1, 1], [], []>} : vector<16x12xf32>, vector<12x64xf32>, vector<16x64xf32> -> vector<16x64xf32>
    %c0_34 = arith.constant 0 : index
    %c0_35 = arith.constant 0 : index
    %38 = vector.load %arg13[%c0_34, %c0_35] : memref<1x64xf32, #tpu.memory_space<vmem>>, vector<1x64xf32>
    %39 = vector.broadcast %38 : vector<1x64xf32> to vector<16x64xf32>
    %40 = arith.addf %37, %39 : vector<16x64xf32>
    %cst_36 = arith.constant 0.000000e+00 : f32
    %41 = vector.broadcast %cst_36 : f32 to vector<16x64xf32>
    %42 = arith.maximumf %40, %41 : vector<16x64xf32>
    %c0_37 = arith.constant 0 : index
    %c0_38 = arith.constant 0 : index
    %43 = vector.load %arg14[%c0_37, %c0_38] : memref<64x128xf32, #tpu.memory_space<vmem>>, vector<64x128xf32>
    %cst_39 = arith.constant dense<0.000000e+00> : vector<16x128xf32>
    %44 = tpu.matmul %42, %43, %cst_39 {dimension_numbers = #tpu.dot_dimension_numbers<[1], [0], [0], [1], [0, 0, 1, 1], [], []>} : vector<16x64xf32>, vector<64x128xf32>, vector<16x128xf32> -> vector<16x128xf32>
    %c0_40 = arith.constant 0 : index
    %c0_41 = arith.constant 0 : index
    %45 = vector.load %arg15[%c0_40, %c0_41] : memref<1x128xf32, #tpu.memory_space<vmem>>, vector<1x128xf32>
    %46 = vector.broadcast %45 : vector<1x128xf32> to vector<16x128xf32>
    %47 = arith.addf %44, %46 : vector<16x128xf32>
    %cst_42 = arith.constant 0.000000e+00 : f32
    %48 = vector.broadcast %cst_42 : f32 to vector<16x128xf32>
    %49 = arith.maximumf %47, %48 : vector<16x128xf32>
    %50 = arith.truncf %49 : vector<16x128xf32> to vector<16x128xbf16>
    %c0_43 = arith.constant 0 : index
    %c0_44 = arith.constant 0 : index
    %51 = vector.load %arg16[%c0_43, %c0_44] : memref<128x896xbf16, #tpu.memory_space<vmem>>, vector<128x896xbf16>
    %cst_45 = arith.constant dense<0.000000e+00> : vector<16x896xf32>
    %52 = tpu.matmul %50, %51, %cst_45 {dimension_numbers = #tpu.dot_dimension_numbers<[1], [0], [0], [1], [0, 0, 1, 1], [], []>} : vector<16x128xbf16>, vector<128x896xbf16>, vector<16x896xf32> -> vector<16x896xf32>
    %c0_46 = arith.constant 0 : index
    %c0_47 = arith.constant 0 : index
    %53 = vector.load %arg17[%c0_46, %c0_47] : memref<1x896xf32, #tpu.memory_space<vmem>>, vector<1x896xf32>
    %54 = vector.broadcast %53 : vector<1x896xf32> to vector<16x896xf32>
    %55 = arith.addf %52, %54 : vector<16x896xf32>
    %56 = math.tanh %55 : vector<16x896xf32>
    %c0_48 = arith.constant 0 : index
    %c0_49 = arith.constant 0 : index
    %57 = vector.load %arg19[%c0_48, %c0_49] : memref<16x896xf32, #tpu.memory_space<vmem>>, vector<16x896xf32>
    tpu.vector_store %arg19[%c0_48, %c0_49], %56 {strides = array<i32>} : memref<16x896xf32, #tpu.memory_space<vmem>>, vector<16x896xf32>,
    return
  }
  func.func @transform_0(%arg0: i32) -> (i32, i32) {
    %c0_i32 = arith.constant 0 : i32
    %c0_i32_0 = arith.constant 0 : i32
    return %arg0, %c0_i32 : i32, i32
  }
  func.func @transform_1(%arg0: i32) -> (i32, i32) {
    %c0_i32 = arith.constant 0 : i32
    %c0_i32_0 = arith.constant 0 : i32
    %c0_i32_1 = arith.constant 0 : i32
    return %c0_i32, %c0_i32_0 : i32, i32
  }
  func.func @transform_2(%arg0: i32) -> (i32, i32) {
    %c0_i32 = arith.constant 0 : i32
    %c0_i32_0 = arith.constant 0 : i32
    %c0_i32_1 = arith.constant 0 : i32
    return %c0_i32, %c0_i32_0 : i32, i32
  }
  func.func @transform_3(%arg0: i32) -> (i32, i32) {
    %c0_i32 = arith.constant 0 : i32
    %c0_i32_0 = arith.constant 0 : i32
    %c0_i32_1 = arith.constant 0 : i32
    return %c0_i32, %c0_i32_0 : i32, i32
  }
  func.func @transform_4(%arg0: i32) -> (i32, i32) {
    %c0_i32 = arith.constant 0 : i32
    %c0_i32_0 = arith.constant 0 : i32
    %c0_i32_1 = arith.constant 0 : i32
    return %c0_i32, %c0_i32_0 : i32, i32
  }
  func.func @transform_5(%arg0: i32) -> (i32, i32) {
    %c0_i32 = arith.constant 0 : i32
    %c0_i32_0 = arith.constant 0 : i32
    %c0_i32_1 = arith.constant 0 : i32
    return %c0_i32, %c0_i32_0 : i32, i32
  }
  func.func @transform_6(%arg0: i32) -> (i32, i32) {
    %c0_i32 = arith.constant 0 : i32
    %c0_i32_0 = arith.constant 0 : i32
    %c0_i32_1 = arith.constant 0 : i32
    return %c0_i32, %c0_i32_0 : i32, i32
  }
  func.func @transform_7(%arg0: i32) -> (i32, i32) {
    %c0_i32 = arith.constant 0 : i32
    %c0_i32_0 = arith.constant 0 : i32
    %c0_i32_1 = arith.constant 0 : i32
    return %c0_i32, %c0_i32_0 : i32, i32
  }
  func.func @transform_8(%arg0: i32) -> (i32, i32) {
    %c0_i32 = arith.constant 0 : i32
    %c0_i32_0 = arith.constant 0 : i32
    %c0_i32_1 = arith.constant 0 : i32
    return %c0_i32, %c0_i32_0 : i32, i32
  }
  func.func @transform_9(%arg0: i32) -> (i32, i32) {
    %c0_i32 = arith.constant 0 : i32
    %c0_i32_0 = arith.constant 0 : i32
    %c0_i32_1 = arith.constant 0 : i32
    return %c0_i32, %c0_i32_0 : i32, i32
  }
  func.func @transform_10(%arg0: i32) -> (i32, i32) {
    %c0_i32 = arith.constant 0 : i32
    %c0_i32_0 = arith.constant 0 : i32
    %c0_i32_1 = arith.constant 0 : i32
    return %c0_i32, %c0_i32_0 : i32, i32
  }
  func.func @transform_11(%arg0: i32) -> (i32, i32) {
    %c0_i32 = arith.constant 0 : i32
    %c0_i32_0 = arith.constant 0 : i32
    %c0_i32_1 = arith.constant 0 : i32
    return %c0_i32, %c0_i32_0 : i32, i32
  }
  func.func @transform_12(%arg0: i32) -> (i32, i32) {
    %c0_i32 = arith.constant 0 : i32
    %c0_i32_0 = arith.constant 0 : i32
    %c0_i32_1 = arith.constant 0 : i32
    return %c0_i32, %c0_i32_0 : i32, i32
  }
  func.func @transform_13(%arg0: i32) -> (i32, i32) {
    %c0_i32 = arith.constant 0 : i32
    %c0_i32_0 = arith.constant 0 : i32
    %c0_i32_1 = arith.constant 0 : i32
    return %c0_i32, %c0_i32_0 : i32, i32
  }
  func.func @transform_14(%arg0: i32) -> (i32, i32) {
    %c0_i32 = arith.constant 0 : i32
    %c0_i32_0 = arith.constant 0 : i32
    %c0_i32_1 = arith.constant 0 : i32
    return %c0_i32, %c0_i32_0 : i32, i32
  }
  func.func @transform_15(%arg0: i32) -> (i32, i32) {
    %c0_i32 = arith.constant 0 : i32
    %c0_i32_0 = arith.constant 0 : i32
    %c0_i32_1 = arith.constant 0 : i32
    return %c0_i32, %c0_i32_0 : i32, i32
  }
  func.func @transform_16(%arg0: i32) -> (i32, i32) {
    %c0_i32 = arith.constant 0 : i32
    %c0_i32_0 = arith.constant 0 : i32
    %c0_i32_1 = arith.constant 0 : i32
    return %c0_i32, %c0_i32_0 : i32, i32
  }
  func.func @transform_17(%arg0: i32) -> (i32, i32) {
    %c0_i32 = arith.constant 0 : i32
    %c0_i32_0 = arith.constant 0 : i32
    return %arg0, %c0_i32 : i32, i32
  }
  func.func @transform_18(%arg0: i32) -> (i32, i32) {
    %c0_i32 = arith.constant 0 : i32
    %c0_i32_0 = arith.constant 0 : i32
    return %arg0, %c0_i32 : i32, i32
  }
}

</mosaic_0001>

<bundles_post_ra>
// kernel: autoencoder_forward.1
= control target key start
LH: loop header
LB: loop body
LE: loop exit
PB: predicated region body
PF: predicated region fallthrough
CT: control target
= control target key end

     0   :  { %s3276_s27 = smov 0   ;;  %s3849_s0 = inlined_call_operand.vmem [shape: f32[64,896], index: 0, kind: input, shape index: {}]   ;;  %s3850_s1 = inlined_call_operand.vmem [shape: bf16[896,128], index: 1, kind: input, shape index: {}]   ;;  %s3851_s2 = inlined_call_operand.vmem [shape: f32[1,128], index: 2, kind: input, shape index: {}]   ;;  %s3852_s3 = inlined_call_operand.vmem [shape: f32[128,64], index: 3, kind: input, shape index: {}]   ;;  %s3853_s4 = inlined_call_operand.vmem [shape: f32[1,64], index: 4, kind: input, shape index: {}]   ;;  %s3854_s5 = inlined_call_operand.vmem [shape: f32[64,12], index: 5, kind: input, shape index: {}]   ;;  %s3855_s6 = inlined_call_operand.vmem [shape: f32[1,12], index: 6, kind: input, shape index: {}]   ;;  %s3856_s7 = inlined_call_operand.vmem [shape: f32[12,3], index: 7, kind: input, shape index: {}]   ;;  %s3857_s8 = inlined_call_operand.vmem [shape: f32[1,3], index: 8, kind: input, shape index: {}]   ;;  %s3858_s9 = inlined_call_operand.vmem [shape: f32[3,12], index: 9, kind: input, shape index: {}]   ;;  %s3859_s10 = inlined_call_operand.vmem [shape: f32[1,12], index: 10, kind: input, shape index: {}]   ;;  %s3860_s11 = inlined_call_operand.vmem [shape: f32[12,64], index: 11, kind: input, shape index: {}]   ;;  %s3861_s12 = inlined_call_operand.vmem [shape: f32[1,64], index: 12, kind: input, shape index: {}]   ;;  %s3862_s13 = inlined_call_operand.vmem [shape: f32[64,128], index: 13, kind: input, shape index: {}]   ;;  %s3863_s14 = inlined_call_operand.vmem [shape: f32[1,128], index: 14, kind: input, shape index: {}]   ;;  %s3864_s15 = inlined_call_operand.vmem [shape: bf16[128,896], index: 15, kind: input, shape index: {}]   ;;  %s3865_s16 = inlined_call_operand.vmem [shape: f32[1,896], index: 16, kind: input, shape index: {}]   ;;  %s3866_s17 = inlined_call_operand.vmem [shape: f32[64,3], index: 17, kind: output, shape index: {0}]   ;;  %s3867_s18 = inlined_call_operand.vmem [shape: f32[64,896], index: 18, kind: output, shape index: {1}]  }
   0x1   :  { %3869 = sst [smem:[#allocation2_spill]] %s3849_s0 }
   0x2   :  { %3870 = sst [smem:[#allocation3_spill]] %s3850_s1 }
   0x3   :  { %3871 = sst [smem:[#allocation4_spill]] %s3851_s2 }
   0x4 LB: > { %s2506_s28 = sadd.s32 4294967295, %s3175_s27   ;;  %p2510_p0 = scmp.ge.s32.totalorder %s3175_s27, 1  ;;  %s3175_s27 = sphi %s3276_s27, %s29_s27  }
   0x5   : > { %p517_p1 = scmp.lt.s32.totalorder %s3175_s27, 5 }
   0x7   : > { %p518_p2 = pnand %p2510_p0, %p517_p1 }
   0x8   : > { %s3872_s0 = sld [smem:[#allocation3_spill]] (!%p518_p2)  ;;  %s2511_s20 = sshll.u32 (!%p518_p2), %s2506_s28, 1  ;;  %v3177_v43 = vmov (!%p518_p2), 0.0   ;;  %vm3178_vm0 = vmmov (!%p518_p2), 0   ;;  %vm1356_vm1 = vcmask (!%p518_p2), 523264   ;;  %vm1456_vm2 = vcmask (!%p518_p2), 1043456  }
   0x9   : > { %521 = sbr.rel (%p518_p2) target bundleno = 1872 (0x750), region = 88  ;;  %p579_p3 = scmp.lt.s32.totalorder (!%p518_p2), %s2511_s20, 7  ;;  %vm3179_vm3 = vmmov (!%p518_p2), 1   ;;  %vm1449_vm5 = vcmask (!%p518_p2), 97280   ;;  %vm1552_vm6 = vcmask (!%p518_p2), 1042432   ;;  %vm1535_vm7 = vcmask (!%p518_p2), 23552  }
   0xa   : > { %s3873_s30 = sld [smem:[#allocation2_spill]] (!%p518_p2)  ;;  %s3874_s26 = sld [smem:[#allocation4_spill]] (!%p518_p2)  ;;  %vm3574_vm4 = vmpackc.low (!%p518_p2), %vm1456_vm2, %vm3179_vm3 }
   0xe   : > { %v3005_v0 = vld [vmem:[%s3872_s0 + $0x40] sm:$0xff] (!%p518_p2)   ;;  %v3009_v4 = vld [vmem:[%s3872_s0 + $0x48] sm:$0xff] (!%p518_p2)   ;;  %v3013_v8 = vld [vmem:[%s3872_s0 + $0x50] sm:$0xff] (!%p518_p2)  }
   0xf   : > { %v3006_v1 = vld [vmem:[%s3872_s0] sm:$0xff] (!%p518_p2)   ;;  %2651 = vmatprep.subr.bf16.mxu0 (!%p518_p2), %v3005_v0  ;;  %v3010_v5 = vld [vmem:[%s3872_s0 + $0x8] sm:$0xff] (!%p518_p2)   ;;  %v3014_v9 = vld [vmem:[%s3872_s0 + $0x10] sm:$0xff] (!%p518_p2)  }
  0x10   : > { %v3007_v2 = vld [vmem:[%s3872_s0 + $0xc0] sm:$0xff]   ;;  %2652 = vmatpush3.bf16.msra.mxu0 %v3006_v1  ;;  %v3011_v6 = vld [vmem:[%s3872_s0 + $0xc8] sm:$0xff]   ;;  %v3015_v10 = vld [vmem:[%s3872_s0 + $0xd0] sm:$0xff]   ;;  %s3878_s20 = smov (!%p579_p3, %s2511_s20), 7 }
  0x11   : > { %v3008_v3 = vld [vmem:[%s3872_s0 + $0x80] sm:$0xff]   ;;  %2673 = vmatprep.subr.bf16.mxu1 %v3007_v2  ;;  %2653 = vmatprep.subr.bf16.mxu0 %v3009_v4  ;;  %v3012_v7 = vld [vmem:[%s3872_s0 + $0x88] sm:$0xff]   ;;  %v3016_v11 = vld [vmem:[%s3872_s0 + $0x90] sm:$0xff]   ;;  %s2992_s19 = smul.u32 56, %s3878_s20 }
  0x12   : > { %2674 = vmatpush3.bf16.msra.mxu1 %v3008_v3  ;;  %v3017_v12 = vld [vmem:[%s3872_s0 + $0x58] sm:$0xff]   ;;  %v3021_v16 = vld [vmem:[%s3872_s0 + $0x60] sm:$0xff]   ;;  %v3025_v20 = vld [vmem:[%s3872_s0 + $0x68] sm:$0xff]  }
  0x13   : > { %2675 = vmatprep.subr.bf16.mxu1 %v3011_v6  ;;  %v3018_v13 = vld [vmem:[%s3872_s0 + $0x18] sm:$0xff]   ;;  %v3022_v17 = vld [vmem:[%s3872_s0 + $0x20] sm:$0xff]   ;;  %v3026_v21 = vld [vmem:[%s3872_s0 + $0x28] sm:$0xff]   ;;  %s3381_s1 = scalar_lea.vmem %s3873_s30, %s2992_s19 }
  0x14   : > { %2654 = vmatpush3.bf16.msra.mxu0 %v3010_v5  ;;  %v3019_v14 = vld [vmem:[%s3872_s0 + $0xd8] sm:$0xff]   ;;  %v3023_v18 = vld [vmem:[%s3872_s0 + $0xe0] sm:$0xff]   ;;  %v3027_v22 = vld [vmem:[%s3872_s0 + $0xe8] sm:$0xff]  }
  0x15   : > { %2655 = vmatprep.subr.bf16.mxu0 %v3013_v8  ;;  %v3020_v15 = vld [vmem:[%s3872_s0 + $0x98] sm:$0xff]   ;;  %v3024_v19 = vld [vmem:[%s3872_s0 + $0xa0] sm:$0xff]   ;;  %v3028_v23 = vld [vmem:[%s3872_s0 + $0xa8] sm:$0xff]  }
  0x16   : > { %2676 = vmatpush3.bf16.msra.mxu1 %v3012_v7  ;;  %v3029_v24 = vld [vmem:[%s3872_s0 + $0x70] sm:$0xff]   ;;  %v3033_v28 = vld [vmem:[%s3872_s0 + $0x78] sm:$0xff]   ;;  %v600_v31 = vld [vmem:[%s3381_s1 + $0x8] sm:$0xff] }
  0x17   : > { %2677 = vmatprep.subr.bf16.mxu1 %v3015_v10  ;;  %v3030_v25 = vld [vmem:[%s3872_s0 + $0x30] sm:$0xff]   ;;  %v3034_v29 = vld [vmem:[%s3872_s0 + $0x38] sm:$0xff]   ;;  %v607_v32 = vld [vmem:[%s3381_s1 + $0x40] sm:$0xff] }
  0x18   : > { %2656 = vmatpush3.bf16.msra.mxu0 %v3014_v9  ;;  %v3031_v26 = vld [vmem:[%s3872_s0 + $0xf0] sm:$0xff]   ;;  %v3035_v30 = vld [vmem:[%s3872_s0 + $0xf8] sm:$0xff]   ;;  %v614_v33 = vpack.c.bf16 %v607_v32, %v600_v31  ;;  %v599_v35 = vld [vmem:[%s3381_s1] sm:$0xff] }
  0x19   : > { %2657 = vmatprep.subr.bf16.mxu0 %v3017_v12  ;;  %v3032_v27 = vld [vmem:[%s3872_s0 + $0xb0] sm:$0xff]   ;;  %v3036_v34 = vld [vmem:[%s3872_s0 + $0xb8] sm:$0xff]   ;;  %v3037_v38 = vld [vmem:[%s3872_s0 + $0x140] sm:$0xff]  }
  0x1a   : > { %2678 = vmatpush3.bf16.msra.mxu1 %v3016_v11  ;;  %v606_v36 = vld [vmem:[%s3381_s1 + $0x38] sm:$0xff]  ;;  %1107 = vmatprep.mubr.bf16.mxu0 %v614_v33  ;;  %v609_v40 = vld [vmem:[%s3381_s1 + $0x50] sm:$0xff]  ;;  %v3038_v42 = vld [vmem:[%s3872_s0 + $0x100] sm:$0xff]  }
  0x1b   : > { %2679 = vmatprep.subr.bf16.mxu1 %v3019_v14  ;;  %v613_v37 = vpack.c.bf16 %v606_v36, %v599_v35  ;;  %v602_v39 = vld [vmem:[%s3381_s1 + $0x18] sm:$0xff]  ;;  %v601_v44 = vld [vmem:[%s3381_s1 + $0x10] sm:$0xff]  ;;  %v608_v45 = vld [vmem:[%s3381_s1 + $0x48] sm:$0xff] }
  0x1c   : > { %2658 = vmatpush3.bf16.msra.mxu0 %v3018_v13  ;;  %v616_v41 = vpack.c.bf16 %v609_v40, %v602_v39  ;;  %v615_v46 = vpack.c.bf16 %v608_v45, %v601_v44  ;;  %v3039_v47 = vld [vmem:[%s3872_s0 + $0x180] sm:$0xff]   ;;  %v3040_v48 = vld [vmem:[%s3872_s0 + $0x148] sm:$0xff]   ;;  %v3043_v51 = vld [vmem:[%s3872_s0 + $0x150] sm:$0xff]  }
  0x1d   : > { %2659 = vmatprep.subr.bf16.mxu0 %v3021_v16  ;;  %v3041_v49 = vld [vmem:[%s3872_s0 + $0x108] sm:$0xff]   ;;  %v3044_v52 = vld [vmem:[%s3872_s0 + $0x110] sm:$0xff]   ;;  %v3046_v54 = vld [vmem:[%s3872_s0 + $0x158] sm:$0xff]  }
  0x1e   : > { %2680 = vmatpush3.bf16.msra.mxu1 %v3020_v15  ;;  %1148 = vmatprep.mubr.bf16.mxu1 %v616_v41  ;;  %v3042_v50 = vld [vmem:[%s3872_s0 + $0x188] sm:$0xff]   ;;  %v3045_v53 = vld [vmem:[%s3872_s0 + $0x190] sm:$0xff]   ;;  %v3047_v55 = vld [vmem:[%s3872_s0 + $0x118] sm:$0xff]  }
  0x1f   : > { %2681 = vmatprep.subr.bf16.mxu1 %v3023_v18  ;;  %v3049_v56 = vld [vmem:[%s3872_s0 + $0x160] sm:$0xff]   ;;  %v3048_v57 = vld [vmem:[%s3872_s0 + $0x198] sm:$0xff]   ;;  %v3052_v59 = vld [vmem:[%s3872_s0 + $0x168] sm:$0xff]  }
  0x20   : > { %2660 = vmatpush3.bf16.msra.mxu0 %v3022_v17  ;;  %v3050_v58 = vld [vmem:[%s3872_s0 + $0x120] sm:$0xff]   ;;  %v3053_v61 = vld [vmem:[%s3872_s0 + $0x128] sm:$0xff]   ;;  %v3055_v62 = vld [vmem:[%s3872_s0 + $0x170] sm:$0xff]  }
  0x21   : > { %2661 = vmatprep.subr.bf16.mxu0 %v3025_v20  ;;  %v3051_v60 = vld [vmem:[%s3872_s0 + $0x1a0] sm:$0xff]   ;;  %v3054_v63 = vld [vmem:[%s3872_s0 + $0x1a8] sm:$0xff]   ;;  %v3056_v0 = vld [vmem:[%s3872_s0 + $0x130] sm:$0xff]  }
  0x22   : > { %2682 = vmatpush3.bf16.msra.mxu1 %v3024_v19  ;;  %v3058_v1 = vld [vmem:[%s3872_s0 + $0x178] sm:$0xff]   ;;  %v604_v2 = vld [vmem:[%s3381_s1 + $0x28] sm:$0xff]  ;;  %v611_v3 = vld [vmem:[%s3381_s1 + $0x60] sm:$0xff] }
  0x23   : > { %2683 = vmatprep.subr.bf16.mxu1 %v3027_v22  ;;  %v3057_v4 = vld [vmem:[%s3872_s0 + $0x1b0] sm:$0xff]   ;;  %v3059_v5 = vld [vmem:[%s3872_s0 + $0x138] sm:$0xff]   ;;  %v618_v6 = vpack.c.bf16 %v611_v3, %v604_v2  ;;  %v603_v7 = vld [vmem:[%s3381_s1 + $0x20] sm:$0xff] }
  0x24   : > { %2662 = vmatpush3.bf16.msra.mxu0 %v3026_v21  ;;  %v610_v8 = vld [vmem:[%s3381_s1 + $0x58] sm:$0xff]  ;;  %v605_v10 = vld [vmem:[%s3381_s1 + $0x30] sm:$0xff]  ;;  %v612_v11 = vld [vmem:[%s3381_s1 + $0x68] sm:$0xff]  ;;  %s2514_s1 = sshll.u32 %s3878_s20, 3 }
  0x25   : > { %2663 = vmatprep.subr.bf16.mxu0 %v3029_v24  ;;  %v3060_v9 = vld [vmem:[%s3872_s0 + $0x1b8] sm:$0xff]   ;;  %v617_v12 = vpack.c.bf16 %v610_v8, %v603_v7  ;;  %v619_v13 = vpack.c.bf16 %v612_v11, %v605_v10  ;;  %v1241_v14 = vld [vmem:[%s3852_s3] sm:$0xff]  ;;  %v1242_v15 = vld [vmem:[%s3852_s3 + $0x8] sm:$0xff]  ;;  %s589_s24 = scalar_lea.vmem %s3866_s17, %s2514_s1 }
  0x26   : > { %2684 = vmatpush3.bf16.msra.mxu1 %v3028_v23  ;;  %v1243_v16 = vld [vmem:[%s3852_s3 + $0x10] sm:$0xff]  ;;  %v2916_v17 = vpack.c.bf16 %v1242_v15, %v1241_v14  ;;  %v1244_v18 = vld [vmem:[%s3852_s3 + $0x18] sm:$0xff]  ;;  %v1245_v20 = vld [vmem:[%s3852_s3 + $0x20] sm:$0xff] }
  0x27   : > { %2685 = vmatprep.subr.bf16.mxu1 %v3031_v26  ;;  %v2920_v19 = vpack.c.bf16 %v1244_v18, %v1243_v16  ;;  %v1246_v21 = vld [vmem:[%s3852_s3 + $0x28] sm:$0xff]  ;;  %v1247_v23 = vld [vmem:[%s3852_s3 + $0x30] sm:$0xff]  ;;  %v1248_v24 = vld [vmem:[%s3852_s3 + $0x38] sm:$0xff] }
  0x28   : > { %2664 = vmatpush3.bf16.msra.mxu0 %v3030_v25  ;;  %v2924_v22 = vpack.c.bf16 %v1246_v21, %v1245_v20  ;;  %v2928_v25 = vpack.c.bf16 %v1248_v24, %v1247_v23  ;;  %v1249_v26 = vld [vmem:[%s3852_s3 + $0x40] sm:$0xff]  ;;  %v1254_v33 = vld [vmem:[%s3852_s3 + $0x68] sm:$0xff]  ;;  %v1255_v35 = vld [vmem:[%s3852_s3 + $0x70] sm:$0xff] }
  0x29   : > { %2665 = vmatprep.subr.bf16.mxu0 %v3033_v28  ;;  %v1253_v32 = vld [vmem:[%s3852_s3 + $0x60] sm:$0xff]  ;;  %v1256_v36 = vld [vmem:[%s3852_s3 + $0x78] sm:$0xff]  ;;  %v1342_v39 = vld [vmem:[%s3854_s5 + $0x8] sm:$0xff] }
  0x2a   : > { %2686 = vmatpush3.bf16.msra.mxu1 %v3032_v27  ;;  %v1250_v27 = vld [vmem:[%s3852_s3 + $0x48] sm:$0xff]  ;;  %v1343_v40 = vld [vmem:[%s3854_s5 + $0x10] sm:$0xff]  ;;  %v1345_v45 = vld [vmem:[%s3854_s5 + $0x20] sm:$0xff] }
  0x2b   : > { %2687 = vmatprep.subr.bf16.mxu1 %v3035_v30  ;;  %v2932_v28 = vpack.c.bf16 %v1250_v27, %v1249_v26  ;;  %v1252_v30 = vld [vmem:[%s3852_s3 + $0x58] sm:$0xff]  ;;  %v2574_v20 = vld [vmem:[%s3853_s4] ss:$0 sm:$0xff] }
  0x2c   : > { %2666 = vmatpush3.bf16.msra.mxu0 %v3034_v29  ;;  %v1251_v29 = vld [vmem:[%s3852_s3 + $0x50] sm:$0xff]  ;;  %v1348_v18 = vld [vmem:[%s3854_s5 + $0x38] sm:$0xff]  ;;  %v1440_v27 = vld [vmem:[%s3856_s7] sm:$0xff] }
  0x2d   : > { %2695 = vmatprep.subr.bf16.mxu0 %v3037_v38  ;;  %v2936_v31 = vpack.c.bf16 %v1252_v30, %v1251_v29  ;;  %v1341_v38 = vld [vmem:[%s3854_s5] sm:$0xff]  ;;  %v3084_v30 = vld [vmem:[%s3864_s15 + $0xb4] ss:$28 sps:$4 sm:$0xff]  }
  0x2e   : > { %2688 = vmatpush3.bf16.msra.mxu1 %v3036_v34  ;;  %v2940_v34 = vpack.c.bf16 %v1254_v33, %v1253_v32  ;;  %v2948_v41 = vpack.c.bf16 %v1342_v39, %v1341_v38  ;;  %v1538_v38 = vld [vmem:[%s3858_s9] sm:$0x7] }
  0x2f   : > { %2784 = vmatprep.subr.bf16.mxu1 %v3177_v43  ;;  %1108 = vmatmul.mubr.bf16.vlgmr.msra.gmra.mrb[0].mxu0 %v613_v37  ;;  %v2944_v37 = vpack.c.bf16 %v1256_v36, %v1255_v35  ;;  %v2578_v39 = vld [vmem:[%s3857_s8] ss:$0 sm:$0xff] }
  0x30   : > { %2696 = vmatpush3.bf16.msra.mxu0 %v3038_v42  ;;  %1189 = vmatprep.mubr.bf16.mxu0 %v618_v6  ;;  %v1344_v42 = vld [vmem:[%s3854_s5 + $0x18] sm:$0xff] }
  0x31   : > { %1149 = vmatmul.mubr.bf16.vlgmr.msra.gmra.mrb[0].mxu1 %v615_v46  ;;  %2697 = vmatprep.subr.bf16.mxu0 %v3040_v48  ;;  %v2952_v44 = vpack.c.bf16 %v1344_v42, %v1343_v40  ;;  %v1346_v46 = vld [vmem:[%s3854_s5 + $0x28] sm:$0xff] }
  0x32   : > { %2785 = vmatpush3.bf16.msra.mxu1 %v3039_v47  ;;  %2800 = vmatprep.mubr.msk.bf16.mxu1 %vm3178_vm0, %v3177_v43  ;;  %v2956_v47 = vpack.c.bf16 %v1346_v46, %v1345_v45  ;;  %v1633_v45 = vld [vmem:[%s3860_s11] sm:$0xff]  ;;  %v1634_v46 = vld [vmem:[%s3860_s11 + $0x8] sm:$0xf] }
  0x33   : > { %2786 = vmatprep.subr.bf16.mxu1 %v3177_v43 }
  0x34   : > { %2698 = vmatpush3.bf16.msra.mxu0 %v3041_v49  ;;  %v2517_v49 = vld [vmem:[%s3874_s26] ss:$0 sm:$0xff] }
  0x35   : > { %2699 = vmatprep.subr.bf16.mxu0 %v3043_v51 }
  0x36   : > { %2787 = vmatpush3.bf16.msra.mxu1 %v3042_v50 }
  0x37   : > { %2788 = vmatprep.subr.bf16.mxu1 %v3177_v43 }
  0x38   : > { %2700 = vmatpush3.bf16.msra.mxu0 %v3044_v52 }
  0x39   : > { %2701 = vmatprep.subr.bf16.mxu0 %v3046_v54 }
  0x3a   : > { %2789 = vmatpush3.bf16.msra.mxu1 %v3045_v53 }
  0x3b   : > { %2790 = vmatprep.subr.bf16.mxu1 %v3177_v43 }
  0x3c   : > { %2702 = vmatpush3.bf16.msra.mxu0 %v3047_v55 }
  0x3d   : > { %2703 = vmatprep.subr.bf16.mxu0 %v3049_v56 }
  0x3e   : > { %2791 = vmatpush3.bf16.msra.mxu1 %v3048_v57 }
  0x3f   : > { %2792 = vmatprep.subr.bf16.mxu1 %v3177_v43 }
  0x40   : > { %2704 = vmatpush3.bf16.msra.mxu0 %v3050_v58 }
  0x41   : > { %2705 = vmatprep.subr.bf16.mxu0 %v3052_v59 }
  0x42   : > { %2793 = vmatpush3.bf16.msra.mxu1 %v3051_v60 }
  0x43   : > { %2794 = vmatprep.subr.bf16.mxu1 %v3177_v43 }
  0x44   : > { %2706 = vmatpush3.bf16.msra.mxu0 %v3053_v61 }
  0x45   : > { %2707 = vmatprep.subr.bf16.mxu0 %v3055_v62 }
  0x46   : > { %2795 = vmatpush3.bf16.msra.mxu1 %v3054_v63 }
  0x47   : > { %2796 = vmatprep.subr.bf16.mxu1 %v3177_v43 }
  0x48   : > { %2708 = vmatpush3.bf16.msra.mxu0 %v3056_v0 }
  0x49   : > { %2709 = vmatprep.subr.bf16.mxu0 %v3058_v1 }
  0x4a   : > { %2797 = vmatpush3.bf16.msra.mxu1 %v3057_v4 }
  0x4b   : > { %2798 = vmatprep.subr.bf16.mxu1 %v3177_v43 }
  0x4c   : > { %2710 = vmatpush3.bf16.msra.mxu0 %v3059_v5 }
  0x4d   : > { %2917 = vmatprep.subr.bf16.mxu0 %v2916_v17 }
  0x4e   : > { %2799 = vmatpush3.bf16.msra.mxu1 %v3060_v9 }
  0x4f   : > { %1190 = vmatmul.mubr.bf16.vlgmr.msra.gmra.mrb[4].mxu0 %v617_v12  ;;  %2949 = vmatprep.subr.bf16.mxu1 %v2948_v41 }
  0x50   : > { %2919 = vmatpush3.bf16.msra.mxu0 %v2916_v17  ;;  %v1347_v17 = vld [vmem:[%s3854_s5 + $0x30] sm:$0xff] }
  0x51   : > { %2801 = vmatmul.mubr.bf16.vlgmr.msra.gmra.mrb[4].mxu1 %v619_v13  ;;  %2921 = vmatprep.subr.bf16.mxu0 %v2920_v19 }
  0x52   : > { %2951 = vmatpush3.bf16.msra.mxu1 %v2948_v41 }
  0x53   : > { %2953 = vmatprep.subr.bf16.mxu1 %v2952_v44 }
  0x54   : > { %2923 = vmatpush3.bf16.msra.mxu0 %v2920_v19  ;;  %v2960_v19 = vpack.c.bf16 %v1348_v18, %v1347_v17  ;;  %v3097_v17 = vld [vmem:[%s3864_s15 + $0x150] ss:$28 sps:$4 sm:$0xff]   ;;  %v2586_v18 = vld [vmem:[%s3861_s12] ss:$0 sm:$0xff] }
  0x55   : > { %2925 = vmatprep.subr.bf16.mxu0 %v2924_v22 }
  0x56   : > { %2955 = vmatpush3.bf16.msra.mxu1 %v2952_v44 }
  0x57   : > { %2957 = vmatprep.subr.bf16.mxu1 %v2956_v47 }
  0x58   : > { %2927 = vmatpush3.bf16.msra.mxu0 %v2924_v22 }
  0x59   : > { %2929 = vmatprep.subr.bf16.mxu0 %v2928_v25 }
  0x5a   : > { %2959 = vmatpush3.bf16.msra.mxu1 %v2956_v47  ;;  %v2970_v47 = vpack.c.bf16 %v1634_v46, %v1633_v45  ;;  %v2590_v45 = vld [vmem:[%s3863_s14] ss:$0 sm:$0xff] }
  0x5b   : > { %2961 = vmatprep.subr.bf16.mxu1 %v2960_v19 }
  0x5c   : > { %2931 = vmatpush3.bf16.msra.mxu0 %v2928_v25 }
  0x5d   : > { %2933 = vmatprep.subr.bf16.mxu0 %v2932_v28 }
  0x5e   : > { %2963 = vmatpush3.bf16.msra.mxu1 %v2960_v19 }
  0x5f   : > { %2865 = vmatprep.subr.msk.mxu1 %vm1552_vm6, %v1538_v38 }
  0x60   : > { %2935 = vmatpush3.bf16.msra.mxu0 %v2932_v28  ;;  %v1441_v28 = vld [vmem:[%s3856_s7 + $0x8] sm:$0xf] }
  0x61   : > { %2937 = vmatprep.subr.bf16.mxu0 %v2936_v31  ;;  %v2964_v29 = vpack.c.bf16 %v1441_v28, %v1440_v27  ;;  %v3070_v27 = vld [vmem:[%s3864_s15 + $0x40] ss:$28 sps:$4 sm:$0xff]  }
  0x62   : > { %v3078_v28 = vld [vmem:[%s3864_s15 + $0x7c] ss:$28 sps:$4 sm:$0xff]  }
  0x64   : > { %2939 = vmatpush3.bf16.msra.mxu0 %v2936_v31  ;;  %v2575_v31 = vld [vmem:[%s3855_s6] ss:$0 sm:$0xff] }
  0x65   : > { %2941 = vmatprep.subr.bf16.mxu0 %v2940_v34 }
  0x68   : > { %2943 = vmatpush3.bf16.msra.mxu0 %v2940_v34 }
  0x69   : > { %2945 = vmatprep.subr.bf16.mxu0 %v2944_v37 }
  0x6c   : > { %2947 = vmatpush3.bf16.msra.mxu0 %v2944_v37 }
  0x6d   : > { %2966 = vmatprep.subr.msk.bf16.mxu0 %vm3574_vm4, %v2964_v29 }
 0x102   : > { %v2667_v48 = vpop.f32.mrb[0].mxu0 }
 0x103   : > { %v2668_v50 = vpop.f32.mrb[1].mxu0 }
 0x104   : > { %v2669_v51 = vadd.f32 %v2668_v50, %v2667_v48  ;;  %v2670_v52 = vpop.f32.mrb[2].mxu0  ;;  %v2689_v53 = vpop.f32.mrb[0].mxu1  ;;  %v1728_v48 = vld [vmem:[%s3862_s13] sm:$0xff] }
 0x105   : > { %v2671_v54 = vpop.f32.mrb[3].mxu0  ;;  %v2690_v57 = vpop.f32.mrb[1].mxu1 }
 0x106   : > { %v1110_v55 = vadd.f32 %v2669_v51, %v2517_v49  ;;  %v2672_v56 = vadd.f32 %v2671_v54, %v2670_v52  ;;  %v2691_v58 = vadd.f32 %v2690_v57, %v2689_v53  ;;  %v2692_v59 = vpop.f32.mrb[2].mxu1  ;;  %v2582_v51 = vld [vmem:[%s3859_s10] ss:$0 sm:$0xff]  ;;  %v1731_v57 = vld [vmem:[%s3862_s13 + $0x18] sm:$0xff] }
 0x107   : > { %v2693_v61 = vpop.f32.mrb[3].mxu1 }
 0x108   : > { %v1113_v60 = vadd.f32 %v2672_v56, %v2517_v49  ;;  %v1151_v62 = vadd.f32 %v2691_v58, %v1110_v55  ;;  %v2694_v63 = vadd.f32 %v2693_v61, %v2692_v59  ;;  %v1729_v49 = vld [vmem:[%s3862_s13 + $0x8] sm:$0xff]  ;;  %v1730_v56 = vld [vmem:[%s3862_s13 + $0x10] sm:$0xff]  ;;  %v1732_v61 = vld [vmem:[%s3862_s13 + $0x20] sm:$0xff] }
 0x109   : > { %v2976_v50 = vpack.c.bf16 %v1729_v49, %v1728_v48 }
 0x10a   : > { %v1154_v0 = vadd.f32 %v2694_v63, %v1113_v60  ;;  %v2980_v60 = vpack.c.bf16 %v1731_v57, %v1730_v56  ;;  %v3113_v56 = vld [vmem:[%s3864_s15 + $0x48] ss:$28 sps:$4 sm:$0xff]   ;;  %v3116_v57 = vld [vmem:[%s3864_s15 + $0x50] ss:$28 sps:$4 sm:$0xff]  }
 0x122   : > { %v2711_v1 = vpop.f32.mrb[4].mxu0 }
 0x123   : > { %v2712_v2 = vpop.f32.mrb[5].mxu0 }
 0x124   : > { %v2713_v3 = vadd.f32 %v2712_v2, %v2711_v1  ;;  %v2714_v4 = vpop.f32.mrb[6].mxu0  ;;  %v1232_v5 = vpop.f32.mrb[4].mxu1  ;;  %v1735_v1 = vld [vmem:[%s3862_s13 + $0x38] sm:$0xff] }
 0x125   : > { %v2715_v6 = vpop.f32.mrb[7].mxu0  ;;  %v2802_v9 = vpop.f32.mrb[5].mxu1 }
 0x126   : > { %v1192_v7 = vadd.f32 %v2713_v3, %v1151_v62  ;;  %v2716_v8 = vadd.f32 %v2715_v6, %v2714_v4  ;;  %v1235_v10 = vpop.f32.mrb[6].mxu1  ;;  %v1733_v62 = vld [vmem:[%s3862_s13 + $0x28] sm:$0xff]  ;;  %v3061_v3 = vld [vmem:[%s3864_s15] ss:$28 sps:$4 sm:$0xff]  }
 0x127   : > { %v2803_v13 = vpop.f32.mrb[7].mxu1  ;;  %v2984_v63 = vpack.c.bf16 %v1733_v62, %v1732_v61  ;;  %v3063_v4 = vld [vmem:[%s3864_s15 + $0x4] ss:$28 sps:$4 sm:$0xff]   ;;  %v3069_v6 = vld [vmem:[%s3864_s15 + $0x3c] ss:$28 sps:$4 sm:$0xff]  }
 0x128   : > { %v1233_v11 = vadd.f32 %v1232_v5, %v1192_v7  ;;  %v1195_v12 = vadd.f32 %v2716_v8, %v1154_v0  ;;  %v1734_v0 = vld [vmem:[%s3862_s13 + $0x30] sm:$0xff]  ;;  %v3066_v5 = vld [vmem:[%s3864_s15 + $0xc] ss:$28 sps:$4 sm:$0xff]   ;;  %v3085_v13 = vld [vmem:[%s3864_s15 + $0xe0] ss:$28 sps:$4 sm:$0xff]  }
 0x129   : > { %v2988_v2 = vpack.c.bf16 %v1735_v1, %v1734_v0  ;;  %v3067_v7 = vld [vmem:[%s3864_s15 + $0x38] ss:$28 sps:$4 sm:$0xff]   ;;  %v3073_v9 = vld [vmem:[%s3864_s15 + $0x70] ss:$28 sps:$4 sm:$0xff]  }
 0x12a   : > { %v1239_v14 = vmax.f32 %v1233_v11, 0.0  ;;  %v1236_v15 = vadd.f32 %v1235_v10, %v1195_v12  ;;  %v3075_v8 = vld [vmem:[%s3864_s15 + $0x74] ss:$28 sps:$4 sm:$0xff]   ;;  %v3081_v10 = vld [vmem:[%s3864_s15 + $0xac] ss:$28 sps:$4 sm:$0xff]  }
 0x12b   : > { %v3079_v11 = vld [vmem:[%s3864_s15 + $0xa8] ss:$28 sps:$4 sm:$0xff]   ;;  %v3123_v61 = vld [vmem:[%s3864_s15 + $0xbc] ss:$28 sps:$4 sm:$0xff]   ;;  %v3127_v0 = vld [vmem:[%s3864_s15 + $0xf4] ss:$28 sps:$4 sm:$0xff]  }
 0x12c   : > { %v1240_v16 = vmax.f32 %v1236_v15, 0.0  ;;  %2836 = vmatprep.mubr.f32.mxu0 %v1239_v14  ;;  %v3087_v12 = vld [vmem:[%s3864_s15 + $0xe4] ss:$28 sps:$4 sm:$0xff]   ;;  %v3093_v14 = vld [vmem:[%s3864_s15 + $0x11c] ss:$28 sps:$4 sm:$0xff]  }
 0x12d   : > { %v3091_v15 = vld [vmem:[%s3864_s15 + $0x118] ss:$28 sps:$4 sm:$0xff]   ;;  %v3125_v1 = vld [vmem:[%s3864_s15 + $0xf0] ss:$28 sps:$4 sm:$0xff]  }
 0x12e   : > { %2837 = vmatmul.mubr.f32.vlgmr.msra.gmra.mrb[8].mxu0 %v1240_v16  ;;  %v3099_v16 = vld [vmem:[%s3864_s15 + $0x154] ss:$28 sps:$4 sm:$0xff]  }
 0x12f   : > { %2969 = vmatpush3.bf16.msk.msra.mxu0 %vm3574_vm4, %v2964_v29  ;;  %v3076_v29 = vld [vmem:[%s3864_s15 + $0x78] ss:$28 sps:$4 sm:$0xff]  }
 0x130   : > { %2216 = vmatprep.subr.bf16.mxu0 %v3063_v4  ;;  %v3121_v62 = vld [vmem:[%s3864_s15 + $0xb8] ss:$28 sps:$4 sm:$0xff]   ;;  %v3129_v4 = vld [vmem:[%s3864_s15 + $0x128] ss:$28 sps:$4 sm:$0xff]  }
 0x201   : > { %v2838_v21 = vpop.f32.mrb[8].mxu0 }
 0x202   : > { %v1336_v22 = vadd.f32 %v2838_v21, %v2574_v20  ;;  %v1330_v23 = vpop.f32.mrb[9].mxu0 }
 0x203   : > { %v1331_v24 = vadd.f32 %v2574_v20, %v1330_v23 }
 0x204   : > { %v1340_v26 = vmax.f32 %v1336_v22, 0.0 }
 0x205   : > { %v1339_v25 = vmax.f32 %v1331_v24, 0.0  ;;  %v3064_v24 = vld [vmem:[%s3864_s15 + $0x8] ss:$28 sps:$4 sm:$0xff]  }
 0x207   : > { %2855 = vmatprep.mubr.msk.f32.mxu1 %vm1356_vm1, %v1339_v25 }
 0x208   : > { %2856 = vmatmul.mubr.msk.f32.vlgmr.msra.gmra.mrb[8].mxu1 %vm1356_vm1, %v1340_v26  ;;  %v3072_v26 = vld [vmem:[%s3864_s15 + $0x44] ss:$28 sps:$4 sm:$0xff]  }
 0x209   : > { %2866 = vmatpush3.msk.msra.mxu1 %vm1552_vm6, %v1538_v38  ;;  %v3105_v38 = vld [vmem:[%s3864_s15 + $0x18c] ss:$28 sps:$4 sm:$0xff]  }
 0x20a   : > { %2972 = vmatprep.subr.msk.bf16.mxu1 %vm3574_vm4, %v2970_v47 }
 0x2db   : > { %v2857_v32 = vpop.f32.mrb[8].mxu1 }
 0x2dc   : > { %v1435_v33 = vadd.f32 %v2857_v32, %v2575_v31  ;;  %v1429_v34 = vpop.f32.mrb[9].mxu1  ;;  %v3090_v32 = vld [vmem:[%s3864_s15 + $0xec] ss:$28 sps:$4 sm:$0xff]  }
 0x2dd   : > { %v1430_v35 = vadd.f32 %v2575_v31, %v1429_v34  ;;  %v3082_v31 = vld [vmem:[%s3864_s15 + $0xb0] ss:$28 sps:$4 sm:$0xff]   ;;  %v3096_v34 = vld [vmem:[%s3864_s15 + $0x124] ss:$28 sps:$4 sm:$0xff]  }
 0x2de   : > { %v1439_v37 = vmax.f32 %v1435_v33, 0.0  ;;  %v3088_v33 = vld [vmem:[%s3864_s15 + $0xe8] ss:$28 sps:$4 sm:$0xff]  }
 0x2df   : > { %v1438_v36 = vmax.f32 %v1430_v35, 0.0  ;;  %v3094_v35 = vld [vmem:[%s3864_s15 + $0x120] ss:$28 sps:$4 sm:$0xff]  }
 0x2e1   : > { %2862 = vmatprep.mubr.msk.f32.mxu0 %vm1449_vm5, %v1438_v36  ;;  %v3102_v36 = vld [vmem:[%s3864_s15 + $0x15c] ss:$28 sps:$4 sm:$0xff]  }
 0x2e2   : > { %2863 = vmatmul.mubr.msk.f32.vlgmr.msra.gmra.mrb[10].mxu0 %vm1449_vm5, %v1439_v37  ;;  %v3100_v37 = vld [vmem:[%s3864_s15 + $0x158] ss:$28 sps:$4 sm:$0xff]  }
 0x2e3   : > { %2217 = vmatpush1.bf16.msra.mxu0 %v3061_v3  ;;  %v3131_v3 = vld [vmem:[%s3864_s15 + $0x12c] ss:$28 sps:$4 sm:$0xff]  }
 0x2e4   : > { %2218 = vmatprep.subr.bf16.mxu0 %v3069_v6  ;;  %v3135_v6 = vld [vmem:[%s3864_s15 + $0x164] ss:$28 sps:$4 sm:$0xff]  }
 0x2e7   : > { %2219 = vmatpush1.bf16.msra.mxu0 %v3067_v7  ;;  %v3133_v7 = vld [vmem:[%s3864_s15 + $0x160] ss:$28 sps:$4 sm:$0xff]  }
 0x2e8   : > { %2220 = vmatprep.subr.bf16.mxu0 %v3075_v8  ;;  %v3136_v8 = vld [vmem:[%s3864_s15 + $0x168] ss:$28 sps:$4 sm:$0xff]  }
 0x2eb   : > { %2221 = vmatpush1.bf16.msra.mxu0 %v3073_v9  ;;  %v3139_v9 = vld [vmem:[%s3864_s15 + $0x19c] ss:$28 sps:$4 sm:$0xff]  }
 0x2ec   : > { %2222 = vmatprep.subr.bf16.mxu0 %v3081_v10  ;;  %v3137_v10 = vld [vmem:[%s3864_s15 + $0x198] ss:$28 sps:$4 sm:$0xff]  }
 0x2ef   : > { %2223 = vmatpush1.bf16.msra.mxu0 %v3079_v11  ;;  %v3140_v11 = vld [vmem:[%s3864_s15 + $0x1a0] ss:$28 sps:$4 sm:$0xff]  }
 0x2f0   : > { %2224 = vmatprep.subr.bf16.mxu0 %v3087_v12  ;;  %v1893_v12 = vlaneseq }
 0x2f3   : > { %2225 = vmatpush1.bf16.msra.mxu0 %v3085_v13  ;;  %v1894_v13 = vshrl.u32 %v1893_v12, 7 }
 0x2f4   : > { %2226 = vmatprep.subr.bf16.mxu0 %v3093_v14 }
 0x2f5   : > { %v1895_v14 = vsub.s32 0, %v1894_v13 }
 0x2f7   : > { %2227 = vmatpush1.bf16.msra.mxu0 %v3091_v15  ;;  %v1903_v15 = vsub.s32 2, %v1894_v13 }
 0x2f8   : > { %2228 = vmatprep.subr.bf16.mxu0 %v3099_v16  ;;  %v1891_v16 = vld [vmem:[%s3865_s16] sm:$0xff] }
 0x2fb   : > { %2229 = vmatpush1.bf16.msra.mxu0 %v3097_v17  ;;  %v1899_v17 = vsub.s32 1, %v1894_v13 }
 0x2fc   : > { %2230 = vmatprep.subr.bf16.mxu0 %v3105_v38 }
 0x3b5   : > { %v2864_v40 = vpop.f32.mrb[10].mxu0 }
 0x3b6   : > { %v1526_v41 = vpop.f32.mrb[11].mxu0  ;;  %v1532_v44 = vadd.f32 %v2864_v40, %v2578_v39  ;;  %v3103_v40 = vld [vmem:[%s3864_s15 + $0x188] ss:$28 sps:$4 sm:$0xff]  }
 0x3b7   : > { %v1527_v42 = vadd.f32 %v2578_v39, %v1526_v41  ;;  %v3108_v39 = vld [vmem:[%s3864_s15 + $0x194] ss:$28 sps:$4 sm:$0xff]   ;;  %2231 = vmatpush1.bf16.msra.mxu0 %v3103_v40 }
 0x3b8   : > { %1537 = vst.msk [vmem:[%s589_s24 + $0x8] sm:$0xff] %vm1535_vm7, %v1532_v44  ;;  %v3106_v41 = vld [vmem:[%s3864_s15 + $0x190] ss:$28 sps:$4 sm:$0xff]  }
 0x3b9   : > { %1536 = vst.msk [vmem:[%s589_s24] sm:$0xff] %vm1535_vm7, %v1527_v42  ;;  %2867 = vmatprep.mubr.msk.f32.mxu1 %vm1535_vm7, %v1527_v42  ;;  %v3111_v42 = vld [vmem:[%s3864_s15 + $0x14] ss:$28 sps:$4 sm:$0xff]   ;;  %s3830_s24 = scalar_lea.vmem %s3867_s18, %s2992_s19 }
 0x3ba   : > { %2868 = vmatmul.mubr.msk.f32.vlgmr.msra.gmra.mrb[10].mxu1 %vm1535_vm7, %v1532_v44  ;;  %v3180_v44 = vmov 0   ;;  %2302 = vmatprep.subr.bf16.mxu0 %v3111_v42 }
 0x3bb   : > { %2975 = vmatpush3.bf16.msk.msra.mxu1 %vm3574_vm4, %v2970_v47  ;;  %2248 = vmatprep.mubr.bf16.mxu0 %v3180_v44 }
 0x3bc   : > { %2977 = vmatprep.subr.bf16.mxu1 %v2976_v50 }
 0x48d   : > { %v2869_v52 = vpop.f32.mrb[10].mxu1 }
 0x48e   : > { %v1628_v53 = vadd.f32 %v2869_v52, %v2582_v51  ;;  %v1622_v54 = vpop.f32.mrb[11].mxu1  ;;  %v3109_v52 = vld [vmem:[%s3864_s15 + $0x10] ss:$28 sps:$4 sm:$0xff]  }
 0x48f   : > { %v1623_v55 = vadd.f32 %v2582_v51, %v1622_v54 }
 0x490   : > { %v1632_v59 = vmax.f32 %v1628_v53, 0.0  ;;  %v3112_v53 = vld [vmem:[%s3864_s15 + $0x18] ss:$28 sps:$4 sm:$0xff]  }
 0x491   : > { %v1631_v58 = vmax.f32 %v1623_v55, 0.0  ;;  %v3115_v55 = vld [vmem:[%s3864_s15 + $0x4c] ss:$28 sps:$4 sm:$0xff]  }
 0x493   : > { %2874 = vmatprep.mubr.msk.f32.mxu1 %vm1449_vm5, %v1631_v58  ;;  %v3119_v58 = vld [vmem:[%s3864_s15 + $0x84] ss:$28 sps:$4 sm:$0xff]  }
 0x494   : > { %2875 = vmatmul.mubr.msk.f32.vlgmr.msra.gmra.mrb[12].mxu1 %vm1449_vm5, %v1632_v59  ;;  %v3117_v59 = vld [vmem:[%s3864_s15 + $0x80] ss:$28 sps:$4 sm:$0xff]  }
 0x495   : > { %2979 = vmatpush3.bf16.msra.mxu1 %v2976_v50 }
 0x496   : > { %2981 = vmatprep.subr.bf16.mxu1 %v2980_v60 }
 0x499   : > { %2983 = vmatpush3.bf16.msra.mxu1 %v2980_v60  ;;  %v3120_v60 = vld [vmem:[%s3864_s15 + $0x88] ss:$28 sps:$4 sm:$0xff]  }
 0x49a   : > { %2985 = vmatprep.subr.bf16.mxu1 %v2984_v63 }
 0x49d   : > { %2987 = vmatpush3.bf16.msra.mxu1 %v2984_v63  ;;  %v3124_v63 = vld [vmem:[%s3864_s15 + $0xc0] ss:$28 sps:$4 sm:$0xff]  }
 0x49e   : > { %2989 = vmatprep.subr.bf16.mxu1 %v2988_v2 }
 0x4a1   : > { %2991 = vmatpush3.bf16.msra.mxu1 %v2988_v2  ;;  %v3128_v2 = vld [vmem:[%s3864_s15 + $0xf8] ss:$28 sps:$4 sm:$0xff]  }
 0x4a2   : > { %2259 = vmatprep.subr.bf16.mxu1 %v3066_v5  ;;  %v3132_v5 = vld [vmem:[%s3864_s15 + $0x130] ss:$28 sps:$4 sm:$0xff]  }
 0x567   : > { %v2876_v19 = vpop.f32.mrb[12].mxu1 }
 0x568   : > { %v1723_v20 = vadd.f32 %v2876_v19, %v2586_v18  ;;  %v1717_v21 = vpop.f32.mrb[13].mxu1  ;;  %v1896_v19 = vrot.slane %v1891_v16, %v1895_v14 }
 0x569   : > { %v1718_v22 = vadd.f32 %v2586_v18, %v1717_v21  ;;  %v1907_v18 = vsub.s32 3, %v1894_v13  ;;  %v1900_v21 = vrot.slane %v1891_v16, %v1899_v17 }
 0x56a   : > { %v1727_v25 = vmax.f32 %v1723_v20, 0.0  ;;  %v1904_v20 = vrot.slane %v1891_v16, %v1903_v15 }
 0x56b   : > { %v1726_v23 = vmax.f32 %v1718_v22, 0.0  ;;  %v1908_v22 = vrot.slane %v1891_v16, %v1907_v18 }
 0x56d   : > { %2893 = vmatprep.mubr.msk.f32.mxu1 %vm1356_vm1, %v1726_v23 }
 0x56e   : > { %2894 = vmatmul.mubr.msk.f32.vlgmr.msra.gmra.mrb[14].mxu1 %vm1356_vm1, %v1727_v25 }
 0x56f   : > { %2260 = vmatpush1.bf16.msra.mxu1 %v3064_v24  ;;  %2291 = vmatprep.mubr.bf16.mxu1 %v3180_v44 }
 0x570   : > { %2261 = vmatprep.subr.bf16.mxu1 %v3072_v26 }
 0x573   : > { %2262 = vmatpush1.bf16.msra.mxu1 %v3070_v27 }
 0x574   : > { %2263 = vmatprep.subr.bf16.mxu1 %v3078_v28 }
 0x577   : > { %2264 = vmatpush1.bf16.msra.mxu1 %v3076_v29 }
 0x578   : > { %2265 = vmatprep.subr.bf16.mxu1 %v3084_v30 }
 0x57b   : > { %2266 = vmatpush1.bf16.msra.mxu1 %v3082_v31 }
 0x57c   : > { %2267 = vmatprep.subr.bf16.mxu1 %v3090_v32 }
 0x57f   : > { %2268 = vmatpush1.bf16.msra.mxu1 %v3088_v33 }
 0x580   : > { %2269 = vmatprep.subr.bf16.mxu1 %v3096_v34 }
 0x583   : > { %2270 = vmatpush1.bf16.msra.mxu1 %v3094_v35 }
 0x584   : > { %2271 = vmatprep.subr.bf16.mxu1 %v3102_v36 }
 0x587   : > { %2272 = vmatpush1.bf16.msra.mxu1 %v3100_v37 }
 0x588   : > { %2273 = vmatprep.subr.bf16.mxu1 %v3108_v39 }
 0x58b   : > { %2274 = vmatpush1.bf16.msra.mxu1 %v3106_v41 }
 0x58c   : > { %2896 = vmatprep.subr.bf16.mxu1 %v3177_v43 }
 0x641   : > { %v2895_v46 = vpop.f32.mrb[14].mxu1 }
 0x642   : > { %v1821_v47 = vadd.f32 %v2895_v46, %v2590_v45  ;;  %v1815_v48 = vpop.f32.mrb[15].mxu1 }
 0x643   : > { %v1816_v49 = vadd.f32 %v2590_v45, %v1815_v48  ;;  %v1919_v48 = vsub.s32 6, %v1894_v13 }
 0x644   : > { %v1825_v50 = vmax.f32 %v1821_v47, 0.0  ;;  %v1911_v47 = vsub.s32 4, %v1894_v13 }
 0x645   : > { %v1824_v51 = vmax.f32 %v1816_v49, 0.0  ;;  %v1915_v49 = vsub.s32 5, %v1894_v13 }
 0x647   : > { %v1826_v54 = vpack.c.bf16 %v1825_v50, %v1824_v51  ;;  %v1912_v50 = vrot.slane %v1891_v16, %v1911_v47  ;;  %v1920_v51 = vrot.slane %v1891_v16, %v1919_v48 }
 0x649   : > { %2249 = vmatmul.mubr.bf16.vlgmr.msra.gmra.mrb[12].mxu0 %v1826_v54  ;;  %2292 = vmatmul.mubr.bf16.vlgmr.msra.gmra.mrb[16].mxu1 %v1826_v54 }
 0x64a   : > { %2303 = vmatpush1.bf16.msra.mxu0 %v3109_v52  ;;  %2897 = vmatpush3.bf16.msra.mxu1 %v3112_v53  ;;  %v1916_v52 = vrot.slane %v1891_v16, %v1915_v49 }
 0x64b   : > { %2304 = vmatprep.subr.bf16.mxu0 %v3115_v55  ;;  %2898 = vmatprep.subr.bf16.mxu1 %v3177_v43 }
 0x64c   : > { %2334 = vmatprep.mubr.bf16.mxu0 %v3180_v44  ;;  %2912 = vmatprep.mubr.msk.bf16.mxu1 %vm3178_vm0, %v3177_v43 }
 0x64e   : > { %2305 = vmatpush1.bf16.msra.mxu0 %v3113_v56  ;;  %2899 = vmatpush3.bf16.msra.mxu1 %v3116_v57 }
 0x64f   : > { %2306 = vmatprep.subr.bf16.mxu0 %v3119_v58  ;;  %2900 = vmatprep.subr.bf16.mxu1 %v3177_v43 }
 0x652   : > { %2307 = vmatpush1.bf16.msra.mxu0 %v3117_v59  ;;  %2901 = vmatpush3.bf16.msra.mxu1 %v3120_v60 }
 0x653   : > { %2308 = vmatprep.subr.bf16.mxu0 %v3123_v61  ;;  %2902 = vmatprep.subr.bf16.mxu1 %v3177_v43 }
 0x656   : > { %2309 = vmatpush1.bf16.msra.mxu0 %v3121_v62  ;;  %2903 = vmatpush3.bf16.msra.mxu1 %v3124_v63 }
 0x657   : > { %2310 = vmatprep.subr.bf16.mxu0 %v3127_v0  ;;  %2904 = vmatprep.subr.bf16.mxu1 %v3177_v43 }
 0x65a   : > { %2311 = vmatpush1.bf16.msra.mxu0 %v3125_v1  ;;  %2905 = vmatpush3.bf16.msra.mxu1 %v3128_v2 }
 0x65b   : > { %2312 = vmatprep.subr.bf16.mxu0 %v3131_v3  ;;  %2906 = vmatprep.subr.bf16.mxu1 %v3177_v43 }
 0x65e   : > { %2313 = vmatpush1.bf16.msra.mxu0 %v3129_v4  ;;  %2907 = vmatpush3.bf16.msra.mxu1 %v3132_v5 }
 0x65f   : > { %2314 = vmatprep.subr.bf16.mxu0 %v3135_v6  ;;  %2908 = vmatprep.subr.bf16.mxu1 %v3177_v43 }
 0x662   : > { %2315 = vmatpush1.bf16.msra.mxu0 %v3133_v7  ;;  %2909 = vmatpush3.bf16.msra.mxu1 %v3136_v8 }
 0x663   : > { %2316 = vmatprep.subr.bf16.mxu0 %v3139_v9  ;;  %2910 = vmatprep.subr.bf16.mxu1 %v3177_v43 }
 0x666   : > { %2317 = vmatpush1.bf16.msra.mxu0 %v3137_v10  ;;  %2911 = vmatpush3.bf16.msra.mxu1 %v3140_v11 }
 0x669   : > { %2335 = vmatmul.mubr.bf16.vlgmr.msra.gmra.mrb[16].mxu0 %v1826_v54  ;;  %2913 = vmatmul.mubr.bf16.vlgmr.msra.gmra.mrb[20].mxu1 %v1826_v54 }
 0x71c   : > { %v2250_v23 = vpop.f32.mrb[12].mxu0  ;;  %v2293_v43 = vpop.f32.mrb[16].mxu1 }
 0x71d   : > { %v2251_v24 = vadd.f32 %v2250_v23, %v1896_v19  ;;  %v2294_v25 = vadd.f32 %v2293_v43, %v1904_v20  ;;  %v2252_v26 = vpop.f32.mrb[13].mxu0  ;;  %v2295_v27 = vpop.f32.mrb[17].mxu1 }
 0x71e   : > { %v2253_v28 = vadd.f32 %v2252_v26, %v1900_v21  ;;  %v2296_v29 = vadd.f32 %v2295_v27, %v1908_v22  ;;  %v2254_v30 = vpop.f32.mrb[14].mxu0  ;;  %v2297_v31 = vpop.f32.mrb[18].mxu1 }
 0x71f   : > { %3141 = vtanh.f32 %v2251_v24  ;;  %v2255_v32 = vadd.f32 %v2254_v30, %v1896_v19  ;;  %v2256_v33 = vpop.f32.mrb[15].mxu0  ;;  %v2299_v34 = vpop.f32.mrb[19].mxu1  ;;  %v2298_v35 = vadd.f32 %v2297_v31, %v1904_v20 }
 0x720   : > { %3143 = vtanh.f32 %v2294_v25  ;;  %v2257_v36 = vadd.f32 %v2256_v33, %v1900_v21  ;;  %v2300_v37 = vadd.f32 %v2299_v34, %v1908_v22 }
 0x721   : > { %3145 = vtanh.f32 %v2253_v28 }
 0x722   : > { %3147 = vtanh.f32 %v2296_v29 }
 0x723   : > { %3149 = vtanh.f32 %v2255_v32 }
 0x724   : > { %3151 = vtanh.f32 %v2298_v35 }
 0x725   : > { %3153 = vtanh.f32 %v2257_v36 }
 0x726   : > { %3155 = vtanh.f32 %v2300_v37 }
 0x729   : > { %v3142_v38 = vpop.eup %3141 }
 0x72a   : > { %v3144_v39 = vpop.eup %3143  ;;  %2400 = vst [vmem:[%s3830_s24] sm:$0xff] %v3142_v38 }
 0x72b   : > { %v3146_v40 = vpop.eup %3145  ;;  %2402 = vst [vmem:[%s3830_s24 + $0x10] sm:$0xff] %v3144_v39 }
 0x72c   : > { %v3148_v41 = vpop.eup %3147  ;;  %2401 = vst [vmem:[%s3830_s24 + $0x8] sm:$0xff] %v3146_v40 }
 0x72d   : > { %v3150_v42 = vpop.eup %3149  ;;  %2403 = vst [vmem:[%s3830_s24 + $0x18] sm:$0xff] %v3148_v41 }
 0x72e   : > { %v3152_v44 = vpop.eup %3151  ;;  %2407 = vst [vmem:[%s3830_s24 + $0x38] sm:$0xff] %v3150_v42 }
 0x72f   : > { %v3154_v45 = vpop.eup %3153  ;;  %2409 = vst [vmem:[%s3830_s24 + $0x48] sm:$0xff] %v3152_v44 }
 0x730   : > { %v3156_v46 = vpop.eup %3155  ;;  %2408 = vst [vmem:[%s3830_s24 + $0x40] sm:$0xff] %v3154_v45 }
 0x731   : > { %2410 = vst [vmem:[%s3830_s24 + $0x50] sm:$0xff] %v3156_v46 }
 0x73c   : > { %v2336_v53 = vpop.f32.mrb[16].mxu0  ;;  %v2379_v54 = vpop.f32.mrb[20].mxu1 }
 0x73d   : > { %v2337_v55 = vadd.f32 %v2336_v53, %v1912_v50  ;;  %v2380_v56 = vadd.f32 %v2379_v54, %v1920_v51  ;;  %v2338_v57 = vpop.f32.mrb[17].mxu0  ;;  %v2914_v58 = vpop.f32.mrb[21].mxu1 }
 0x73e   : > { %v2339_v59 = vadd.f32 %v2338_v57, %v1916_v52  ;;  %v2340_v60 = vpop.f32.mrb[18].mxu0  ;;  %v2382_v61 = vpop.f32.mrb[22].mxu1 }
 0x73f   : > { %3157 = vtanh.f32 %v2337_v55  ;;  %v2341_v62 = vadd.f32 %v2340_v60, %v1912_v50  ;;  %v2383_v63 = vadd.f32 %v2382_v61, %v1920_v51  ;;  %v2342_v0 = vpop.f32.mrb[19].mxu0  ;;  %v2915_v1 = vpop.f32.mrb[23].mxu1 }
 0x740   : > { %3159 = vtanh.f32 %v2380_v56  ;;  %v2343_v2 = vadd.f32 %v2342_v0, %v1916_v52 }
 0x741   : > { %3161 = vtanh.f32 %v2339_v59 }
 0x742   : > { %3163 = vtanh.f32 %v2341_v62 }
 0x743   : > { %3165 = vtanh.f32 %v2383_v63 }
 0x744   : > { %3167 = vtanh.f32 %v2343_v2 }
 0x749   : > { %v3158_v3 = vpop.eup %3157 }
 0x74a   : > { %v3160_v4 = vpop.eup %3159  ;;  %2404 = vst [vmem:[%s3830_s24 + $0x20] sm:$0xff] %v3158_v3 }
 0x74b   : > { %v3162_v5 = vpop.eup %3161  ;;  %2406 = vst [vmem:[%s3830_s24 + $0x30] sm:$0xff] %v3160_v4 }
 0x74c   : > { %v3164_v6 = vpop.eup %3163  ;;  %2405 = vst [vmem:[%s3830_s24 + $0x28] sm:$0xff] %v3162_v5 }
 0x74d   : > { %v3166_v7 = vpop.eup %3165  ;;  %2411 = vst [vmem:[%s3830_s24 + $0x58] sm:$0xff] %v3164_v6 }
 0x74e   : > { %v3168_v8 = vpop.eup %3167  ;;  %2413 = vst [vmem:[%s3830_s24 + $0x68] sm:$0xff] %v3166_v7 }
 0x74f   : > { %2412 = vst [vmem:[%s3830_s24 + $0x60] sm:$0xff] %v3168_v8 }
 0x750 PF: > { %s29_s27 = sadd.s32 1, %s3175_s27  }
 0x751   : > { %p26_p4 = scmp.ge.s32.totalorder %s29_s27, 6  }
 0x753   :  { %28 = sbr.rel (!%p26_p4) target bundleno = 4 (0x4), region = 130 }

</bundles_post_ra>
